<compile_context>
chip_gen: v7x
topology: tpu7x:2x2x1
jax: 0.10.0
libtpu: 0.0.40
codegen_flags: <defaults>
</compile_context>

<pallas_src>
import functools
import math

import numpy as np
import jax
import jax.numpy as jnp
from jax.experimental import pallas as pl
from jax.experimental.pallas import tpu as pltpu


PYRAMIDS = (0.5, 0.75)          # default pyramids of MSC

_MAX_SPATIAL_TILE = 2048        # lane-axis tile for the conv matmul (x128)
_NC_TILE_BUDGET = 4 << 20       # ~bytes of per-step block data for resize/max
_VMEM_LIMIT = 32 * 1024 * 1024  # safe on v5e/v6e (128 MiB) and v7x (64 MiB)


# ----------------------------- helpers -----------------------------------

@functools.lru_cache(maxsize=None)
def _bilinear_matrix(size_in, size_out):
    """1-D bilinear interpolation matrix, PyTorch align_corners=True."""
    A = np.zeros((size_out, size_in), np.float32)
    if size_out == 1:
        A[0, 0] = 1.0
        return A
    scale = (size_in - 1) / (size_out - 1)
    for i in range(size_out):
        src = i * scale
        i0 = min(int(np.floor(src)), size_in - 1)
        i1 = min(i0 + 1, size_in - 1)
        w1 = src - i0
        A[i, i0] += 1.0 - w1
        A[i, i1] += w1
    return A


def _pick_divisor_tile(n, max_tile):
    """Largest divisor of n that is <= max_tile (>=1)."""
    t = int(max(1, min(n, max_tile)))
    while n % t:
        t -= 1
    return t


def _im2col_nchw(x):
    """3x3, stride-1, pad-1 im2col -> (N, Cin*9, H*W). Pure layout glue."""
    N, Cin, H, W = x.shape
    xp = jnp.pad(x, ((0, 0), (0, 0), (1, 1), (1, 1)))
    patches = jnp.stack(
        [xp[:, :, kh:kh + H, kw:kw + W] for kh in range(3) for kw in range(3)],
        axis=2)                                      # (N, Cin, 9, H, W)
    return patches.reshape(N, Cin * 9, H * W)


def _separable_resize(x, ah, awt):
    """x:(B,H,W), ah:(h_out,H), awt:(W,w_out) -> (B,h_out,w_out).

    Pass 1 contracts W (lane dim) with a plain matmul; pass 2 contracts H
    with a batched matmul (ah broadcast once per kernel body, not per row).
    """
    B = x.shape[0]
    tmp = jnp.einsum('bhw,wj->bhj', x, awt,
                     preferred_element_type=jnp.float32)          # (B, H, w_out)
    ahb = jnp.broadcast_to(ah, (B,) + ah.shape)                   # (B, h_out, H)
    return jnp.einsum('bih,bhj->bij', ahb, tmp,
                      preferred_element_type=jnp.float32)         # (B, h_out, w_out)


# ----------------------------- Pallas kernels -----------------------------

def _conv_mm_kernel(x_ref, w_ref, b_ref, o_ref):
    # x: (1, Kpad, T), w: (Cout, Kpad), b: (Cout, 1) -> o: (1, Cout, T)
    o_ref[0] = (jnp.dot(w_ref[...], x_ref[0],
                        preferred_element_type=jnp.float32) + b_ref[...])


def _resize_kernel(x_ref, ah_ref, awt_ref, o_ref):
    # Fused separable bilinear resize of a (tnc, H, W) block.
    o_ref[...] = _separable_resize(x_ref[...], ah_ref[...], awt_ref[...])


def _make_upmax_kernel(n_scales):
    """Fused (separable upsample of each pyramid logits) + max-over-scales."""
    def kernel(*refs):
        l0_ref = refs[0]
        o_ref = refs[-1]
        sr = refs[1:-1]
        acc = l0_ref[...]                              # (tnc, Hl, Wl)
        for s in range(n_scales):
            lp = sr[3 * s][...]                        # (tnc, Hs, Ws)
            ah = sr[3 * s + 1][...]                    # (Hl, Hs)
            awt = sr[3 * s + 2][...]                   # (Ws, Wl)
            up = _separable_resize(lp, ah, awt)        # (tnc, Hl, Wl)
            acc = jnp.maximum(acc, up)
        o_ref[...] = acc
    return kernel


# ----------------------------- Pallas wrappers ----------------------------

def _pallas_conv_matmul(xcat, w_mat, b_mat):
    """(N, Kpad, S) x (Cout, Kpad) + (Cout, 1) -> (N, Cout, S), tiled over S."""
    N, Kpad, S = xcat.shape
    Cout = w_mat.shape[0]
    tile = S if S <= _MAX_SPATIAL_TILE else _MAX_SPATIAL_TILE
    grid = (N, pl.cdiv(S, tile))
    cost = pl.CostEstimate(
        flops=2 * N * Cout * Kpad * S,
        transcendentals=0,
        bytes_accessed=4 * (N * Kpad * S + Cout * Kpad + Cout + N * Cout * S))
    return pl.pallas_call(
        _conv_mm_kernel,
        out_shape=jax.ShapeDtypeStruct((N, Cout, S), jnp.float32),
        grid=grid,
        in_specs=[
            pl.BlockSpec((1, Kpad, tile), lambda n, j: (n, 0, j)),
            pl.BlockSpec((Cout, Kpad), lambda n, j: (0, 0)),
            pl.BlockSpec((Cout, 1), lambda n, j: (0, 0)),
        ],
        out_specs=pl.BlockSpec((1, Cout, tile), lambda n, j: (n, 0, j)),
        compiler_params=pltpu.CompilerParams(
            dimension_semantics=("parallel", "parallel"),
            vmem_limit_bytes=_VMEM_LIMIT),
        cost_estimate=cost,
    )(xcat, w_mat, b_mat)


def bilinear_resize_nchw(x, h_out, w_out):
    """F.interpolate(mode='bilinear', align_corners=True) via fused separable matmuls."""
    N, C, H, W = x.shape
    NC = N * C
    ah = jnp.asarray(_bilinear_matrix(H, h_out))       # (h_out, H)
    awt = jnp.asarray(_bilinear_matrix(W, w_out).T)    # (W, w_out)
    row_bytes = 4 * (H * W + H * w_out + h_out * w_out)
    tnc = _pick_divisor_tile(NC, max(1, _NC_TILE_BUDGET // max(1, row_bytes)))
    cost = pl.CostEstimate(
        flops=2 * NC * (H * W * w_out + h_out * H * w_out),
        transcendentals=0,
        bytes_accessed=4 * (NC * H * W + NC * h_out * w_out
                            + h_out * H + W * w_out))
    y = pl.pallas_call(
        _resize_kernel,
        out_shape=jax.ShapeDtypeStruct((NC, h_out, w_out), jnp.float32),
        grid=(NC // tnc,),
        in_specs=[
            pl.BlockSpec((tnc, H, W), lambda i: (i, 0, 0)),
            pl.BlockSpec((h_out, H), lambda i: (0, 0)),
            pl.BlockSpec((W, w_out), lambda i: (0, 0)),
        ],
        out_specs=pl.BlockSpec((tnc, h_out, w_out), lambda i: (i, 0, 0)),
        compiler_params=pltpu.CompilerParams(
            dimension_semantics=("parallel",),
            vmem_limit_bytes=_VMEM_LIMIT),
        cost_estimate=cost,
    )(x.reshape(NC, H, W), ah, awt)
    return y.reshape(N, C, h_out, w_out)


def _pallas_upsample_max(logits, logits_pyramid):
    """max(logits, upsample(lp) for lp in pyramid) -- resize + max fused."""
    N, Cout, Hl, Wl = logits.shape
    NC = N * Cout

    row_bytes = 4 * 2 * Hl * Wl
    flops = 0
    for lp in logits_pyramid:
        Hs, Ws = int(lp.shape[2]), int(lp.shape[3])
        row_bytes += 4 * (Hs * Ws + Hs * Wl)
        flops += 2 * NC * (Hs * Ws * Wl + Hl * Hs * Wl)
    tnc = _pick_divisor_tile(NC, max(1, _NC_TILE_BUDGET // max(1, row_bytes)))

    args = [logits.reshape(NC, Hl, Wl)]
    in_specs = [pl.BlockSpec((tnc, Hl, Wl), lambda i: (i, 0, 0))]
    bytes_accessed = 4 * 2 * NC * Hl * Wl
    for lp in logits_pyramid:
        Hs, Ws = int(lp.shape[2]), int(lp.shape[3])
        ah = jnp.asarray(_bilinear_matrix(Hs, Hl))      # (Hl, Hs)
        awt = jnp.asarray(_bilinear_matrix(Ws, Wl).T)   # (Ws, Wl)
        args += [lp.reshape(NC, Hs, Ws), ah, awt]
        in_specs += [
            pl.BlockSpec((tnc, Hs, Ws), lambda i: (i, 0, 0)),
            pl.BlockSpec((Hl, Hs), lambda i: (0, 0)),
            pl.BlockSpec((Ws, Wl), lambda i: (0, 0)),
        ]
        bytes_accessed += 4 * (NC * Hs * Ws + Hl * Hs + Ws * Wl)

    kernel = _make_upmax_kernel(len(logits_pyramid))
    y = pl.pallas_call(
        kernel,
        out_shape=jax.ShapeDtypeStruct((NC, Hl, Wl), jnp.float32),
        grid=(NC // tnc,),
        in_specs=in_specs,
        out_specs=pl.BlockSpec((tnc, Hl, Wl), lambda i: (i, 0, 0)),
        compiler_params=pltpu.CompilerParams(
            dimension_semantics=("parallel",),
            vmem_limit_bytes=_VMEM_LIMIT),
        cost_estimate=pl.CostEstimate(flops=flops, transcendentals=0,
                                      bytes_accessed=bytes_accessed),
    )(*args)
    return y.reshape(N, Cout, Hl, Wl)


# ------------------------------- forward ----------------------------------

def msc_forward(x, w, b, training=False, pyramids=PYRAMIDS):
    """MSC.forward with scale = Conv2d(Cin, Cout, 3, padding=1)."""
    N, Cin, H, W = x.shape
    Cout = w.shape[0]
    K = Cin * 9
    Kpad = -(-K // 8) * 8                      # sublane-aligned contraction dim

    # Pyramid-scaled inputs (fused separable bilinear resize kernels).
    sizes = [(int(math.floor(H * p)), int(math.floor(W * p))) for p in pyramids]
    xs = [x] + [bilinear_resize_nchw(x, hs, ws) for hs, ws in sizes]

    # im2col per scale, concatenated along spatial axis -> ONE conv matmul.
    cols = [_im2col_nchw(xi) for xi in xs]
    spatials = [int(c.shape[2]) for c in cols]
    xcat = jnp.concatenate(cols, axis=2) if len(cols) > 1 else cols[0]
    if Kpad != K:
        xcat = jnp.pad(xcat, ((0, 0), (0, Kpad - K), (0, 0)))

    w_mat = w.reshape(Cout, K)
    if Kpad != K:
        w_mat = jnp.pad(w_mat, ((0, 0), (0, Kpad - K)))
    b_mat = b.reshape(Cout, 1)

    ocat = _pallas_conv_matmul(xcat, w_mat, b_mat)      # (N, Cout, S_total)

    offs = np.concatenate([[0], np.cumsum(spatials)]).astype(int)
    logits_list = []
    for idx, xi in enumerate(xs):
        Hi, Wi = int(xi.shape[2]), int(xi.shape[3])
        li = ocat[:, :, int(offs[idx]):int(offs[idx + 1])].reshape(N, Cout, Hi, Wi)
        logits_list.append(li)

    logits = logits_list[0]
    logits_pyramid = logits_list[1:]

    # Fused upsample-back + max over scales (single HBM write).
    logits_max = _pallas_upsample_max(logits, logits_pyramid)

    if training:
        return logits_list + [logits_max]
    return logits_max


# --------------------------------- main -----------------------------------

if __name__ == "__main__":
    key = jax.random.PRNGKey(0)
    kx, kw, kb = jax.random.split(key, 3)

    N, Cin, H, W = 2, 4, 16, 16
    Cout = 8

    x = jax.random.normal(kx, (N, Cin, H, W), jnp.float32)
    w = jax.random.normal(kw, (Cout, Cin, 3, 3), jnp.float32) * 0.1
    b = jax.random.normal(kb, (Cout,), jnp.float32) * 0.1

    out = jax.block_until_ready(msc_forward(x, w, b, training=False))
    assert out.shape == (N, Cout, H, W), out.shape

    # Pure-JAX reference (same math, no Pallas) to validate the kernels.
    def ref_forward(x, w, b):
        w2 = w.reshape(Cout, Cin * 9)

        def conv(xi):
            n_, c_, h_, w_ = xi.shape
            xc = _im2col_nchw(xi)                                  # (n, K, S)
            o = jnp.einsum('ok,nks->nos', w2, xc) + b.reshape(1, Cout, 1)
            return o.reshape(n_, Cout, h_, w_)

        def rs(t, ho, wo):
            hi, wi = t.shape[2], t.shape[3]
            ah = jnp.asarray(_bilinear_matrix(hi, ho))             # (ho, hi)
            awt = jnp.asarray(_bilinear_matrix(wi, wo).T)          # (wi, wo)
            tmp = jnp.einsum('nchw,wj->nchj', t, awt)
            return jnp.einsum('ih,nchj->ncij', ah, tmp)

        l0 = conv(x)
        ls = [conv(rs(x, int(math.floor(H * p)), int(math.floor(W * p))))
              for p in PYRAMIDS]
        allo = [l0] + [rs(l, l0.shape[2], l0.shape[3]) for l in ls]
        return jnp.max(jnp.stack(allo), axis=0)

    ref = jax.block_until_ready(ref_forward(x, w, b))
    np.testing.assert_allclose(np.asarray(out), np.asarray(ref),
                               rtol=5e-4, atol=5e-4)

    # Training-mode smoke test (list: [logits] + logits_pyramid + [logits_max]).
    outs_train = jax.block_until_ready(msc_forward(x, w, b, training=True))
    assert len(outs_train) == 1 + len(PYRAMIDS) + 1
    assert outs_train[0].shape == (N, Cout, H, W)

    print("KERNEL_OK")
</pallas_src>

<mosaic_0001>
module attributes {stable_mosaic.version = 11 : i64} {
  func.func @_resize_kernel(%arg0: i32, %arg1: memref<8x16x16xf32, #tpu.memory_space<vmem>>, %arg2: memref<8x16xf32, #tpu.memory_space<vmem>>, %arg3: memref<16x8xf32, #tpu.memory_space<vmem>>, %arg4: memref<8x8x8xf32, #tpu.memory_space<vmem>>) attributes {dimension_semantics = [#tpu.dimension_semantics<parallel>], iteration_bounds = array<i64: 1>, scalar_prefetch = 0 : i64, scratch_operands = 0 : i64, tpu.core_type = #tpu.core_type<tc>, window_params = [{transform_indices = @transform_0, window_bounds = array<i64: 8, 16, 16>}, {pipeline_mode = #tpu.pipeline_mode<synchronous>, transform_indices = @transform_1, window_bounds = array<i64: 8, 16>}, {pipeline_mode = #tpu.pipeline_mode<synchronous>, transform_indices = @transform_2, window_bounds = array<i64: 16, 8>}, {transform_indices = @transform_3, window_bounds = array<i64: 8, 8, 8>}]} {
    %c0 = arith.constant 0 : index
    %c0_0 = arith.constant 0 : index
    %c0_1 = arith.constant 0 : index
    %0 = vector.load %arg1[%c0, %c0_0, %c0_1] : memref<8x16x16xf32, #tpu.memory_space<vmem>>, vector<8x16x16xf32>
    %c0_2 = arith.constant 0 : index
    %c0_3 = arith.constant 0 : index
    %1 = vector.load %arg2[%c0_2, %c0_3] : memref<8x16xf32, #tpu.memory_space<vmem>>, vector<8x16xf32>
    %c0_4 = arith.constant 0 : index
    %c0_5 = arith.constant 0 : index
    %2 = vector.load %arg3[%c0_4, %c0_5] : memref<16x8xf32, #tpu.memory_space<vmem>>, vector<16x8xf32>
    "tpu.trace_start"() <{level = 10 : i32, message = "bhw,wj->bhj"}> : () -> ()
    %cst = arith.constant dense<0.000000e+00> : vector<8x16x8xf32>
    %3 = tpu.matmul %0, %2, %cst {dimension_numbers = #tpu.dot_dimension_numbers<[2], [0], [0, 1], [1], [0, 0, 0, 1, 1, 1], [], []>} : vector<8x16x16xf32>, vector<16x8xf32>, vector<8x16x8xf32> -> vector<8x16x8xf32>
    "tpu.trace_stop"() : () -> ()
    %4 = vector.shape_cast %1 : vector<8x16xf32> to vector<1x8x16xf32>
    %5 = vector.broadcast %4 : vector<1x8x16xf32> to vector<8x8x16xf32>
    "tpu.trace_start"() <{level = 10 : i32, message = "bih,bhj->bij"}> : () -> ()
    %cst_6 = arith.constant dense<0.000000e+00> : vector<8x8x8xf32>
    %6 = tpu.matmul %5, %3, %cst_6 {dimension_numbers = #tpu.dot_dimension_numbers<[2], [1], [1], [2], [0, 0, 0, 1, 1, 2], [0], [0]>} : vector<8x8x16xf32>, vector<8x16x8xf32>, vector<8x8x8xf32> -> vector<8x8x8xf32>
    "tpu.trace_stop"() : () -> ()
    %c0_7 = arith.constant 0 : index
    %c0_8 = arith.constant 0 : index
    %c0_9 = arith.constant 0 : index
    %7 = vector.load %arg4[%c0_7, %c0_8, %c0_9] : memref<8x8x8xf32, #tpu.memory_space<vmem>>, vector<8x8x8xf32>
    tpu.vector_store %arg4[%c0_7, %c0_8, %c0_9], %6 {strides = array<i32>} : memref<8x8x8xf32, #tpu.memory_space<vmem>>, vector<8x8x8xf32>,
    return
  }
  func.func @transform_0(%arg0: i32) -> (i32, i32, i32) {
    %c0_i32 = arith.constant 0 : i32
    %c0_i32_0 = arith.constant 0 : i32
    %c0_i32_1 = arith.constant 0 : i32
    return %arg0, %c0_i32, %c0_i32_0 : i32, i32, i32
  }
  func.func @transform_1(%arg0: i32) -> (i32, i32) {
    %c0_i32 = arith.constant 0 : i32
    %c0_i32_0 = arith.constant 0 : i32
    %c0_i32_1 = arith.constant 0 : i32
    return %c0_i32, %c0_i32_0 : i32, i32
  }
  func.func @transform_2(%arg0: i32) -> (i32, i32) {
    %c0_i32 = arith.constant 0 : i32
    %c0_i32_0 = arith.constant 0 : i32
    %c0_i32_1 = arith.constant 0 : i32
    return %c0_i32, %c0_i32_0 : i32, i32
  }
  func.func @transform_3(%arg0: i32) -> (i32, i32, i32) {
    %c0_i32 = arith.constant 0 : i32
    %c0_i32_0 = arith.constant 0 : i32
    %c0_i32_1 = arith.constant 0 : i32
    return %arg0, %c0_i32, %c0_i32_0 : i32, i32, i32
  }
}

</mosaic_0001>

<bundles_post_ra>
// kernel: tpu_custom_call.1
= control target key start
LH: loop header
LB: loop body
LE: loop exit
PB: predicated region body
PF: predicated region fallthrough
CT: control target
= control target key end

     0   :  { %8 = vsyncpa [#allocation3], 0  ;;  %s1170_s0 = inlined_call_operand.hbm [shape: f32[8,16,16], index: 0, kind: input, shape index: {}]   ;;  %s1171_s1 = inlined_call_operand.vmem [shape: f32[8,16], index: 1, kind: input, shape index: {}]   ;;  %s1172_s2 = inlined_call_operand.vmem [shape: f32[16,8], index: 2, kind: input, shape index: {}]   ;;  %s1173_s3 = inlined_call_operand.hbm [shape: f32[8,8,8], index: 3, kind: output, shape index: {}]  }
   0x1   :  { %9 = vsyncpa [#allocation4], 0  ;;  %s1064_s12 = smov [#allocation2]   ;;  %s1016_s16 = scalar_lea.hbm %s1170_s0, 2048 }
   0x2   :  { %s15_s13 = sshll.u32 %s1064_s12, 4  ;;  %p1017_p0 = scmp.ne.s32.totalorder %s1170_s0, %s1016_s16  ;;  %s16_s13 = int_to_ptr.vmem [resolvable:$true] %s15_s13 }
   0x3   :  { %p1020_p1 = scmp.lt.u32.totalorder %s1016_s16, %s1170_s0 }
   0x5   :  { %p1022_p2 = pnand %p1020_p1, %p1017_p0 }
   0x7   :  { %1025 = shalt.err (!%p1022_p2)
}
   0x8   :  { %s1026_s21 = scalar_lea.vmem %s16_s13, 2048  ;;  %p1031_p4 = scmp.lt.s32.totalorder %s16_s13, %s16_s13 }
   0x9   :  { %p1027_p3 = scmp.ne.s32.totalorder %s16_s13, %s1026_s21  ;;  %p1032_p5 = scmp.lt.s32.totalorder %s1026_s21, %s1026_s21 }
   0xb   :  { %p1033_p6 = por %p1032_p5, %p1031_p4 }
   0xd   :  { %p1034_p7 = pnand %p1033_p6, %p1027_p3 }
   0xf   :  { %1037 = shalt.err (!%p1034_p7)
}
  0x10   :  { %s1065_s22 = smov 128   ;;  %s1066_s23 = smov 8  }
  0x11   :  { %21 = dma.hbm_to_vmem [thread:$0]  %s1170_s0, 2048, %s16_s13, [#allocation3], %s1065_s22, %s1065_s22, %s1066_s23  }
  0x12   :  { %1060 = dma.done.wait [#allocation3], 2048  }
  0x13   :  { %1061 = vsyncadd [#allocation3], 4294965248  ;;  %vm48_vm0 = vcmask 130048   ;;  %v46_v0 = vld [vmem:[%s1172_s2] sm:$0xff]  ;;  %v47_v1 = vld [vmem:[%s1172_s2 + $0x8] sm:$0xff]  ;;  %v1067_v19 = vmov 0.0|0.0  }
  0x14   :  { %v29_v2 = vld [vmem:[#allocation2] sm:$0xff]  ;;  %v981_v3 = vpack.c.bf16 %v47_v1, %v46_v0  ;;  %v30_v4 = vld [vmem:[#allocation2 + $0x8] sm:$0xff]  ;;  %v31_v5 = vld [vmem:[#allocation2 + $0x10] sm:$0xff]  ;;  %985 = vmatprep.subr.bf16.mxu1 %v1067_v19  ;;  %vm1068_vm1 = vmmov 0   ;;  %v1069_v20 = vmov 0.0   ;;  %vm805_vm2 = vcmask 64512  }
  0x15   :  { %901 = vmatprep.mubr.msk.f32.mxu0 %vm48_vm0, %v29_v2  ;;  %v32_v6 = vld [vmem:[#allocation2 + $0x18] sm:$0xff]  ;;  %v33_v7 = vld [vmem:[#allocation2 + $0x20] sm:$0xff]  ;;  %v34_v8 = vld [vmem:[#allocation2 + $0x28] sm:$0xff]  ;;  %929 = vmatprep.mubr.msk.f32.mxu1 %vm1068_vm1, %v1069_v20 }
  0x16   :  { %982 = vmatprep.subr.bf16.mxu0 %v981_v3  ;;  %v35_v9 = vld [vmem:[#allocation2 + $0x30] sm:$0xff]  ;;  %v36_v10 = vld [vmem:[#allocation2 + $0x38] sm:$0xff]  ;;  %v37_v11 = vld [vmem:[#allocation2 + $0x40] sm:$0xff] }
  0x17   :  { %984 = vmatpush3.bf16.msra.mxu0 %v981_v3  ;;  %v38_v12 = vld [vmem:[#allocation2 + $0x48] sm:$0xff]  ;;  %v39_v13 = vld [vmem:[#allocation2 + $0x50] sm:$0xff]  ;;  %v40_v14 = vld [vmem:[#allocation2 + $0x58] sm:$0xff] }
  0x18   :  { %v41_v15 = vld [vmem:[#allocation2 + $0x60] sm:$0xff]  ;;  %v42_v16 = vld [vmem:[#allocation2 + $0x68] sm:$0xff]  ;;  %v43_v17 = vld [vmem:[#allocation2 + $0x70] sm:$0xff] }
  0x19   :  { %v44_v18 = vld [vmem:[#allocation2 + $0x78] sm:$0xff]  ;;  %v45_v25 = vld [vmem:[%s1171_s1] sm:$0xff]  ;;  %s1070_s1 = smov [#allocation5]  }
  0x1a   :  { %902 = vmatmul.mubr.msk.f32.vlgmr.msra.gmra.mrb[0].mxu0 %vm48_vm0, %v30_v4  ;;  %s819_s30 = sshll.u32 %s1070_s1, 4  ;;  %s820_s30 = int_to_ptr.vmem [resolvable:$true] %s819_s30 }
  0x1b   :  { %904 = vmatprep.mubr.msk.f32.mxu0 %vm48_vm0, %v31_v5  ;;  %s1038_s4 = scalar_lea.vmem %s820_s30, 1024  ;;  %p1043_p9 = scmp.lt.s32.totalorder %s820_s30, %s820_s30 }
  0x1c   :  { %p1039_p8 = scmp.ne.s32.totalorder %s820_s30, %s1038_s4  ;;  %p1044_p10 = scmp.lt.s32.totalorder %s1038_s4, %s1038_s4 }
  0x1e   :  { %905 = vmatmul.mubr.msk.f32.gmra.mrb[2].mxu0 %vm48_vm0, %v32_v6  ;;  %p1045_p11 = por %p1044_p10, %p1043_p9 }
  0x1f   :  { %907 = vmatprep.mubr.msk.f32.mxu0 %vm48_vm0, %v33_v7 }
  0x20   :  { %p1046_p12 = pnand %p1045_p11, %p1039_p8 }
  0x22   :  { %908 = vmatmul.mubr.msk.f32.gmra.mrb[4].mxu0 %vm48_vm0, %v34_v8 }
  0x23   :  { %910 = vmatprep.mubr.msk.f32.mxu0 %vm48_vm0, %v35_v9 }
  0x26   :  { %911 = vmatmul.mubr.msk.f32.gmra.mrb[6].mxu0 %vm48_vm0, %v36_v10 }
  0x27   :  { %913 = vmatprep.mubr.msk.f32.mxu0 %vm48_vm0, %v37_v11 }
  0x2a   :  { %914 = vmatmul.mubr.msk.f32.gmra.mrb[8].mxu0 %vm48_vm0, %v38_v12 }
  0x2b   :  { %916 = vmatprep.mubr.msk.f32.mxu0 %vm48_vm0, %v39_v13 }
  0x2e   :  { %917 = vmatmul.mubr.msk.f32.gmra.mrb[10].mxu0 %vm48_vm0, %v40_v14 }
  0x2f   :  { %919 = vmatprep.mubr.msk.f32.mxu0 %vm48_vm0, %v41_v15 }
  0x32   :  { %920 = vmatmul.mubr.msk.f32.gmra.mrb[12].mxu0 %vm48_vm0, %v42_v16 }
  0x33   :  { %922 = vmatprep.mubr.msk.f32.mxu0 %vm48_vm0, %v43_v17 }
  0x36   :  { %923 = vmatmul.mubr.msk.f32.gmra.mrb[14].mxu0 %vm48_vm0, %v44_v18 }
  0xed   :  { %v903_v21 = vpop.f32.mrb[0].mxu0 }
  0xee   :  { %v163_v22 = vpop.f32.mrb[1].mxu0 }
  0xef   :  { %v986_v23 = vpack.c.bf16 %v903_v21, %v163_v22 }
  0xf1   :  { %v906_v24 = vpop.f32.mrb[2].mxu0  ;;  %987 = vmatpush3.bf16.msra.mxu1 %v986_v23 }
  0xf2   :  { %v173_v26 = vpop.f32.mrb[3].mxu0  ;;  %988 = vmatprep.subr.bf16.mxu1 %v1067_v19 }
  0xf3   :  { %v989_v27 = vpack.c.bf16 %v906_v24, %v173_v26 }
  0xf4   :  { %930 = vmatmul.mubr.msk.f32.vlgmr.msra.gmra.mrb[0].mxu1 %vm48_vm0, %v45_v25 }
  0xf5   :  { %v909_v28 = vpop.f32.mrb[4].mxu0  ;;  %990 = vmatpush3.bf16.msra.mxu1 %v989_v27  ;;  %936 = vmatprep.mubr.msk.f32.mxu1 %vm1068_vm1, %v1069_v20 }
  0xf6   :  { %v183_v29 = vpop.f32.mrb[5].mxu0  ;;  %991 = vmatprep.subr.bf16.mxu1 %v1067_v19 }
  0xf7   :  { %v992_v30 = vpack.c.bf16 %v909_v28, %v183_v29 }
  0xf8   :  { %937 = vmatmul.mubr.msk.f32.vlgmr.msra.gmra.mrb[2].mxu1 %vm48_vm0, %v45_v25 }
  0xf9   :  { %v912_v31 = vpop.f32.mrb[6].mxu0  ;;  %993 = vmatpush3.bf16.msra.mxu1 %v992_v30  ;;  %943 = vmatprep.mubr.msk.f32.mxu1 %vm1068_vm1, %v1069_v20 }
  0xfa   :  { %v193_v32 = vpop.f32.mrb[7].mxu0  ;;  %994 = vmatprep.subr.bf16.mxu1 %v1067_v19 }
  0xfb   :  { %v995_v33 = vpack.c.bf16 %v912_v31, %v193_v32 }
  0xfc   :  { %944 = vmatmul.mubr.msk.f32.vlgmr.msra.gmra.mrb[4].mxu1 %vm48_vm0, %v45_v25 }
  0xfd   :  { %v915_v34 = vpop.f32.mrb[8].mxu0  ;;  %996 = vmatpush3.bf16.msra.mxu1 %v995_v33  ;;  %950 = vmatprep.mubr.msk.f32.mxu1 %vm1068_vm1, %v1069_v20 }
  0xfe   :  { %v203_v35 = vpop.f32.mrb[9].mxu0  ;;  %997 = vmatprep.subr.bf16.mxu1 %v1067_v19 }
  0xff   :  { %v998_v36 = vpack.c.bf16 %v915_v34, %v203_v35 }
 0x100   :  { %951 = vmatmul.mubr.msk.f32.vlgmr.msra.gmra.mrb[6].mxu1 %vm48_vm0, %v45_v25 }
 0x101   :  { %v918_v37 = vpop.f32.mrb[10].mxu0  ;;  %999 = vmatpush3.bf16.msra.mxu1 %v998_v36  ;;  %957 = vmatprep.mubr.msk.f32.mxu1 %vm1068_vm1, %v1069_v20 }
 0x102   :  { %v213_v38 = vpop.f32.mrb[11].mxu0  ;;  %1000 = vmatprep.subr.bf16.mxu1 %v1067_v19 }
 0x103   :  { %v1001_v39 = vpack.c.bf16 %v918_v37, %v213_v38 }
 0x104   :  { %958 = vmatmul.mubr.msk.f32.vlgmr.msra.gmra.mrb[8].mxu1 %vm48_vm0, %v45_v25 }
 0x105   :  { %v921_v40 = vpop.f32.mrb[12].mxu0  ;;  %1002 = vmatpush3.bf16.msra.mxu1 %v1001_v39  ;;  %964 = vmatprep.mubr.msk.f32.mxu1 %vm1068_vm1, %v1069_v20 }
 0x106   :  { %v223_v41 = vpop.f32.mrb[13].mxu0  ;;  %1003 = vmatprep.subr.bf16.mxu1 %v1067_v19 }
 0x107   :  { %v1004_v42 = vpack.c.bf16 %v921_v40, %v223_v41 }
 0x108   :  { %965 = vmatmul.mubr.msk.f32.vlgmr.msra.gmra.mrb[10].mxu1 %vm48_vm0, %v45_v25 }
 0x109   :  { %v924_v43 = vpop.f32.mrb[14].mxu0  ;;  %1005 = vmatpush3.bf16.msra.mxu1 %v1004_v42  ;;  %971 = vmatprep.mubr.msk.f32.mxu1 %vm1068_vm1, %v1069_v20 }
 0x10a   :  { %v233_v44 = vpop.f32.mrb[15].mxu0  ;;  %1006 = vmatprep.subr.bf16.mxu1 %v1067_v19 }
 0x10b   :  { %v1007_v45 = vpack.c.bf16 %v924_v43, %v233_v44 }
 0x10c   :  { %972 = vmatmul.mubr.msk.f32.vlgmr.msra.gmra.mrb[12].mxu1 %vm48_vm0, %v45_v25 }
 0x10d   :  { %1008 = vmatpush3.bf16.msra.mxu1 %v1007_v45  ;;  %978 = vmatprep.mubr.msk.f32.mxu1 %vm1068_vm1, %v1069_v20 }
 0x110   :  { %979 = vmatmul.mubr.msk.f32.vlgmr.msra.gmra.mrb[14].mxu1 %vm48_vm0, %v45_v25 }
 0x1c7   :  { %v311_v46 = vpop.f32.mrb[0].mxu1 }
 0x1c8   :  { %806 = vst.msk [vmem:[#allocation5] sm:$0xff] %vm805_vm2, %v311_v46  ;;  %v931_v47 = vpop.f32.mrb[1].mxu1 }
 0x1cb   :  { %v381_v48 = vpop.f32.mrb[2].mxu1 }
 0x1cc   :  { %807 = vst.msk [vmem:[#allocation5 + $0x8] sm:$0xff] %vm805_vm2, %v381_v48  ;;  %v938_v49 = vpop.f32.mrb[3].mxu1 }
 0x1cf   :  { %v451_v50 = vpop.f32.mrb[4].mxu1 }
 0x1d0   :  { %808 = vst.msk [vmem:[#allocation5 + $0x10] sm:$0xff] %vm805_vm2, %v451_v50  ;;  %v945_v51 = vpop.f32.mrb[5].mxu1 }
 0x1d3   :  { %v521_v52 = vpop.f32.mrb[6].mxu1 }
 0x1d4   :  { %809 = vst.msk [vmem:[#allocation5 + $0x18] sm:$0xff] %vm805_vm2, %v521_v52  ;;  %v952_v53 = vpop.f32.mrb[7].mxu1 }
 0x1d7   :  { %v591_v54 = vpop.f32.mrb[8].mxu1 }
 0x1d8   :  { %810 = vst.msk [vmem:[#allocation5 + $0x20] sm:$0xff] %vm805_vm2, %v591_v54  ;;  %v959_v55 = vpop.f32.mrb[9].mxu1 }
 0x1db   :  { %v661_v56 = vpop.f32.mrb[10].mxu1 }
 0x1dc   :  { %811 = vst.msk [vmem:[#allocation5 + $0x28] sm:$0xff] %vm805_vm2, %v661_v56  ;;  %v966_v57 = vpop.f32.mrb[11].mxu1 }
 0x1df   :  { %v731_v58 = vpop.f32.mrb[12].mxu1 }
 0x1e0   :  { %812 = vst.msk [vmem:[#allocation5 + $0x30] sm:$0xff] %vm805_vm2, %v731_v58  ;;  %v973_v59 = vpop.f32.mrb[13].mxu1 }
 0x1e3   :  { %v801_v60 = vpop.f32.mrb[14].mxu1 }
 0x1e4   :  { %813 = vst.msk [vmem:[#allocation5 + $0x38] sm:$0xff] %vm805_vm2, %v801_v60  ;;  %v980_v61 = vpop.f32.mrb[15].mxu1 }
 0x1e5   :  { %1049 = shalt.err (!%p1046_p12)
}
 0x1e6   :  { %s1050_s7 = scalar_lea.hbm %s1173_s3, 1024 }
 0x1e7   :  { %p1051_p13 = scmp.ne.s32.totalorder %s1173_s3, %s1050_s7  ;;  %p1054_p0 = scmp.lt.u32.totalorder %s1050_s7, %s1173_s3 }
 0x1e9   :  { %p1056_p1 = pnand %p1054_p0, %p1051_p13 }
 0x1eb   :  { %1059 = shalt.err (!%p1056_p1)
}
 0x1ec   :  { %825 = dma.vmem_to_hbm [thread:$0]  %s820_s30, 1024, %s1173_s3, [#allocation4], %s1065_s22, %s1065_s22, %s1066_s23  }
 0x1ed   :  { %1062 = dma.done.wait [#allocation4], 1024  }
 0x1ee   :  { %1063 = vsyncadd [#allocation4], 4294966272 }
 0x1ef   :  { %829 = vsyncpa [#allocation3], 1 }
 0x1f0   :  { %830 = vsyncpa [#allocation4], 1 }

</bundles_post_ra>
